<compile_context>
chip_gen: v7x
topology: tpu7x:2x2x1
jax: 0.10.0
libtpu: 0.0.40
codegen_flags: <defaults>
</compile_context>

<pallas_src>
import math

import jax
import jax.numpy as jnp
from jax.experimental import pallas as pl
from jax.experimental.pallas import tpu as pltpu


_GELU_C = math.sqrt(2.0 / math.pi)


def _gelu_new(x):
    # HuggingFace "gelu_new": 0.5*x*(1+tanh(sqrt(2/pi)*(x+0.044715*x^3)))
    return 0.5 * x * (1.0 + jnp.tanh(_GELU_C * (x + 0.044715 * x * x * x)))


def _round_up(n, m):
    return ((n + m - 1) // m) * m


def _ceil_div(a, b):
    return -(-a // b)


def _mlp_kernel(x_ref, w1_ref, b1_ref, w2_ref, b2_ref, o_ref, acc_ref):
    # x_ref: (TM, D)   w1_ref: (D, TH)   b1_ref: (1, TH) f32
    # w2_ref: (TH, D)  b2_ref: (1, D) f32   o_ref: (TM, D)   acc_ref: (TM, D) f32
    k = pl.program_id(1)
    nk = pl.num_programs(1)

    @pl.when(k == 0)
    def _():
        acc_ref[...] = jnp.zeros_like(acc_ref)

    x = x_ref[...]
    # fc1 chunk + bias + GELU, all in f32 (EUP tanh; safe on v5e with no bf16 VPU).
    h = jnp.dot(x, w1_ref[...], preferred_element_type=jnp.float32)
    h = h + b1_ref[...]
    h = _gelu_new(h)
    # Cast back to compute dtype so bf16 runs the second matmul at full MXU
    # rate; accumulation stays f32.
    h = h.astype(x.dtype)
    partial = jnp.dot(h, w2_ref[...], preferred_element_type=jnp.float32)

    @pl.when(k < nk - 1)
    def _():
        acc_ref[...] += partial

    @pl.when(k == nk - 1)
    def _():
        # Epilogue: fold the last partial product and fc2 bias straight into
        # the output (no extra acc round-trip for the final step).
        o_ref[...] = (acc_ref[...] + partial + b2_ref[...]).astype(o_ref.dtype)


def _tpu_config():
    """Generation-aware tiling defaults."""
    try:
        kind = jax.devices()[0].device_kind.lower()
    except Exception:
        kind = ""
    if "7x" in kind or "v7" in kind:
        # 64 MiB VMEM per TC, 2 TensorCores/chip, ~310 flops/byte crossover.
        return dict(gen="v7x", tm=512, th=512, lane=256,
                    budget=40 << 20, limit=48 << 20, wbufs=2, cores=2)
    if "v6" in kind or "trillium" in kind:
        # 128 MiB VMEM, ~650 flops/byte crossover -> big row tiles.
        return dict(gen="v6e", tm=1024, th=1024, lane=256,
                    budget=88 << 20, limit=100 << 20, wbufs=2, cores=1)
    if "v5 lite" in kind or "v5lite" in kind or "v5e" in kind:
        # 128 MiB VMEM, slow HBM -> triple-buffer the weight stream.
        return dict(gen="v5e", tm=512, th=1024, lane=128,
                    budget=88 << 20, limit=100 << 20, wbufs=3, cores=1)
    # Unknown part: conservative defaults that fit any TPU's VMEM.
    return dict(gen="unknown", tm=512, th=512, lane=128,
                budget=40 << 20, limit=64 << 20, wbufs=2, cores=1)


def _vmem_footprint(tm, th, dp, cbytes, obytes, wbufs):
    """Estimated VMEM bytes: pipelined buffers + accumulator + GELU temp."""
    x_bufs = 2 * tm * dp * cbytes                 # x row tile, double buffered
    w_bufs = wbufs * (dp * th + th * dp) * cbytes  # W1/W2 chunks
    b_bufs = 2 * (th + dp) * 4                    # f32 bias chunks
    o_bufs = 2 * tm * dp * obytes                 # output tile
    acc = tm * dp * 4                             # f32 accumulator scratch
    h_tmp = tm * th * 4                           # f32 GELU intermediate
    return x_bufs + w_bufs + b_bufs + o_bufs + acc + h_tmp


def mlp_pallas(x, w1, b1, w2, b2, *, compute_dtype=None, tm=None, th=None):
    """x: [B, S, D]; w1: [D, H]; b1: [H]; w2: [H, D]; b2: [D]."""
    B, S, D = x.shape
    H = w1.shape[1]
    M = B * S
    out_dtype = x.dtype

    # bf16 compute for f32 inputs (full-rate MXU, half the HBM weight traffic).
    # Accumulation / GELU / biases remain f32. Pass jnp.float32 for exactness.
    if compute_dtype is None:
        compute_dtype = jnp.bfloat16 if x.dtype == jnp.float32 else x.dtype
    compute_dtype = jnp.dtype(compute_dtype)
    cbytes = compute_dtype.itemsize
    obytes = jnp.dtype(out_dtype).itemsize
    # Packed sublane multiple: 8 for 32-bit, 16 for bf16, 32 for int8/fp8.
    sub = {4: 8, 2: 16, 1: 32}.get(cbytes, 8)

    cfg = _tpu_config()
    lane = cfg["lane"]
    tm_t = cfg["tm"] if tm is None else tm
    th_t = cfg["th"] if th is None else th

    Dp = _round_up(D, lane)

    # Row tile: capped by the (padded) row count; on multi-TC parts make sure
    # there are at least `cores` row tiles so the parallel axis shards.
    tm_sel = max(sub, min(tm_t, _round_up(M, sub)))
    if cfg["cores"] > 1 and M > sub:
        tm_sel = min(tm_sel, _round_up(_ceil_div(M, cfg["cores"]), sub))
    th_sel = max(lane, min(th_t, _round_up(H, lane)))

    # Shrink tiles until the pipelined footprint fits the VMEM budget
    # (th first, floor 256; then tm).
    while _vmem_footprint(tm_sel, th_sel, Dp, cbytes, obytes, cfg["wbufs"]) > cfg["budget"]:
        if th_sel > max(256, lane):
            th_sel = max(lane, _round_up(th_sel // 2, lane))
        elif tm_sel > sub:
            tm_sel = max(sub, _round_up(tm_sel // 2, sub))
        else:
            break

    Mp = _round_up(M, tm_sel)
    Hp = _round_up(H, th_sel)
    m_tiles = Mp // tm_sel
    h_tiles = Hp // th_sel

    # Lane-dense, shape-robust padding; padding is inert (see header comment).
    x2 = jnp.pad(x.reshape(M, D).astype(compute_dtype), ((0, Mp - M), (0, Dp - D)))
    w1p = jnp.pad(w1.astype(compute_dtype), ((0, Dp - D), (0, Hp - H)))
    w2p = jnp.pad(w2.astype(compute_dtype), ((0, Hp - H), (0, Dp - D)))
    # Biases stay f32: they are tiny and are added on the f32 accumulate path.
    b1p = jnp.pad(b1.astype(jnp.float32), (0, Hp - H)).reshape(1, Hp)
    b2p = jnp.pad(b2.astype(jnp.float32), (0, Dp - D)).reshape(1, Dp)

    footprint = _vmem_footprint(tm_sel, th_sel, Dp, cbytes, obytes, cfg["wbufs"])
    vmem_limit = int(min(cfg["limit"], max(32 << 20, footprint + (12 << 20))))

    # Honest HBM-traffic hint: weights are re-streamed once per row tile.
    cost = pl.CostEstimate(
        flops=2 * 2 * Mp * Dp * Hp,                      # two matmuls
        transcendentals=Mp * Hp,                         # tanh per hidden elem
        bytes_accessed=int(
            Mp * Dp * cbytes                             # x read once
            + m_tiles * (Dp * Hp + Hp * Dp) * cbytes     # W1 + W2 per row tile
            + m_tiles * (Hp + Dp) * 4                    # f32 biases per row tile
            + Mp * Dp * obytes),                         # output
    )

    # v5e: triple-buffer the weight streams to hide HBM DMA latency jitter.
    extra_w_buf = cfg["wbufs"] > 2 and hasattr(pl, "Buffered")

    def _wspec(shape, index_map):
        if extra_w_buf:
            return pl.BlockSpec(shape, index_map,
                                pipeline_mode=pl.Buffered(cfg["wbufs"]))
        return pl.BlockSpec(shape, index_map)

    out = pl.pallas_call(
        _mlp_kernel,
        out_shape=jax.ShapeDtypeStruct((Mp, Dp), out_dtype),
        grid_spec=pltpu.PrefetchScalarGridSpec(
            num_scalar_prefetch=0,
            grid=(m_tiles, h_tiles),
            in_specs=[
                pl.BlockSpec((tm_sel, Dp), lambda i, k: (i, 0)),   # x row tile
                _wspec((Dp, th_sel), lambda i, k: (0, k)),         # W1 column chunk
                pl.BlockSpec((1, th_sel), lambda i, k: (0, k)),    # b1 chunk (f32)
                _wspec((th_sel, Dp), lambda i, k: (k, 0)),         # W2 row chunk
                pl.BlockSpec((1, Dp), lambda i, k: (0, 0)),        # b2 (resident, f32)
            ],
            out_specs=pl.BlockSpec((tm_sel, Dp), lambda i, k: (i, 0)),
            scratch_shapes=[pltpu.VMEM((tm_sel, Dp), jnp.float32)],
        ),
        compiler_params=pltpu.CompilerParams(
            dimension_semantics=("parallel", "arbitrary"),
            vmem_limit_bytes=vmem_limit,
        ),
        cost_estimate=cost,
    )(x2, w1p, b1p, w2p, b2p)

    return out[:M, :D].reshape(B, S, D)


def mlp_reference(x, w1, b1, w2, b2):
    h = jnp.einsum("bsd,dh->bsh", x, w1) + b1
    h = _gelu_new(h)
    return jnp.einsum("bsh,hd->bsd", h, w2) + b2


if __name__ == "__main__":
    # Small shapes: batch=2, seq=8, n_embd=32, n_inner=4*n_embd=128
    B, S, D = 2, 8, 32
    H = 4 * D

    key = jax.random.PRNGKey(0)
    k_x, k_w1, k_b1, k_w2, k_b2 = jax.random.split(key, 5)

    x = jax.random.normal(k_x, (B, S, D), dtype=jnp.float32)
    # nn.Linear-like init (uniform in +/- 1/sqrt(fan_in)), deterministic via PRNGKey(0)
    lim1 = 1.0 / math.sqrt(D)
    lim2 = 1.0 / math.sqrt(H)
    w1 = jax.random.uniform(k_w1, (D, H), jnp.float32, -lim1, lim1)
    b1 = jax.random.uniform(k_b1, (H,), jnp.float32, -lim1, lim1)
    w2 = jax.random.uniform(k_w2, (H, D), jnp.float32, -lim2, lim2)
    b2 = jax.random.uniform(k_b2, (D,), jnp.float32, -lim2, lim2)

    y_ref = mlp_reference(x, w1, b1, w2, b2)

    # Default fast path: f32 params run the MXU in bf16 (f32 accumulate + f32 GELU).
    y = mlp_pallas(x, w1, b1, w2, b2)
    jax.block_until_ready(y)
    assert y.shape == x.shape and y.dtype == x.dtype
    assert jnp.allclose(y, y_ref, atol=1e-1, rtol=1e-1), "bf16-compute mismatch vs reference"

    # Exact-precision path (matches the f32 PyTorch module bit-for-bit tolerance).
    y32 = mlp_pallas(x, w1, b1, w2, b2, compute_dtype=jnp.float32)
    jax.block_until_ready(y32)
    assert jnp.allclose(y32, y_ref, atol=1e-5, rtol=1e-5), "f32-compute mismatch vs reference"

    print("KERNEL_OK")
</pallas_src>

<mosaic_0001>
module attributes {stable_mosaic.version = 11 : i64} {
  func.func @_mlp_kernel(%arg0: i32, %arg1: i32, %arg2: memref<16x128xbf16, #tpu.memory_space<vmem>>, %arg3: memref<128x128xbf16, #tpu.memory_space<vmem>>, %arg4: memref<1x128xf32, #tpu.memory_space<vmem>>, %arg5: memref<128x128xbf16, #tpu.memory_space<vmem>>, %arg6: memref<1x128xf32, #tpu.memory_space<vmem>>, %arg7: memref<16x128xf32, #tpu.memory_space<vmem>>, %arg8: memref<16x128xf32, #tpu.memory_space<vmem>>) attributes {dimension_semantics = [#tpu.dimension_semantics<parallel>, #tpu.dimension_semantics<arbitrary>], iteration_bounds = array<i64: 1, 1>, scalar_prefetch = 0 : i64, scratch_operands = 1 : i64, tpu.core_type = #tpu.core_type<tc>, window_params = [{transform_indices = @transform_0, window_bounds = array<i64: 16, 128>}, {transform_indices = @transform_1, window_bounds = array<i64: 128, 128>}, {transform_indices = @transform_2, window_bounds = array<i64: 1, 128>}, {transform_indices = @transform_3, window_bounds = array<i64: 128, 128>}, {pipeline_mode = #tpu.pipeline_mode<synchronous>, transform_indices = @transform_4, window_bounds = array<i64: 1, 128>}, {transform_indices = @transform_5, window_bounds = array<i64: 16, 128>}]} {
    %c0_i32 = arith.constant 0 : i32
    %0 = arith.cmpi eq, %arg1, %c0_i32 : i32
    %1 = arith.extui %0 : i1 to i32
    %c0_i32_0 = arith.constant 0 : i32
    %2 = arith.cmpi ne, %1, %c0_i32_0 : i32
    scf.if %2 {
      %cst_17 = arith.constant 0.000000e+00 : f32
      %31 = vector.broadcast %cst_17 : f32 to vector<16x128xf32>
      %c0_18 = arith.constant 0 : index
      %c0_19 = arith.constant 0 : index
      %32 = vector.load %arg8[%c0_18, %c0_19] : memref<16x128xf32, #tpu.memory_space<vmem>>, vector<16x128xf32>
      tpu.vector_store %arg8[%c0_18, %c0_19], %31 {strides = array<i32>} : memref<16x128xf32, #tpu.memory_space<vmem>>, vector<16x128xf32>,
    } else {
    }
    %c0 = arith.constant 0 : index
    %c0_1 = arith.constant 0 : index
    %3 = vector.load %arg2[%c0, %c0_1] : memref<16x128xbf16, #tpu.memory_space<vmem>>, vector<16x128xbf16>
    %c0_2 = arith.constant 0 : index
    %c0_3 = arith.constant 0 : index
    %4 = vector.load %arg3[%c0_2, %c0_3] : memref<128x128xbf16, #tpu.memory_space<vmem>>, vector<128x128xbf16>
    %cst = arith.constant dense<0.000000e+00> : vector<16x128xf32>
    %5 = tpu.matmul %3, %4, %cst {dimension_numbers = #tpu.dot_dimension_numbers<[1], [0], [0], [1], [0, 0, 1, 1], [], []>} : vector<16x128xbf16>, vector<128x128xbf16>, vector<16x128xf32> -> vector<16x128xf32>
    %c0_4 = arith.constant 0 : index
    %c0_5 = arith.constant 0 : index
    %6 = vector.load %arg4[%c0_4, %c0_5] : memref<1x128xf32, #tpu.memory_space<vmem>>, vector<1x128xf32>
    %7 = vector.broadcast %6 : vector<1x128xf32> to vector<16x128xf32>
    %8 = arith.addf %5, %7 : vector<16x128xf32>
    %cst_6 = arith.constant 5.000000e-01 : f32
    %9 = vector.broadcast %cst_6 : f32 to vector<16x128xf32>
    %10 = arith.mulf %9, %8 : vector<16x128xf32>
    %cst_7 = arith.constant 4.471500e-02 : f32
    %11 = vector.broadcast %cst_7 : f32 to vector<16x128xf32>
    %12 = arith.mulf %11, %8 : vector<16x128xf32>
    %13 = arith.mulf %12, %8 : vector<16x128xf32>
    %14 = arith.mulf %13, %8 : vector<16x128xf32>
    %15 = arith.addf %8, %14 : vector<16x128xf32>
    %cst_8 = arith.constant 0.797884583 : f32
    %16 = vector.broadcast %cst_8 : f32 to vector<16x128xf32>
    %17 = arith.mulf %16, %15 : vector<16x128xf32>
    %18 = math.tanh %17 : vector<16x128xf32>
    %cst_9 = arith.constant 1.000000e+00 : f32
    %19 = vector.broadcast %cst_9 : f32 to vector<16x128xf32>
    %20 = arith.addf %19, %18 : vector<16x128xf32>
    %21 = arith.mulf %10, %20 : vector<16x128xf32>
    %22 = arith.truncf %21 : vector<16x128xf32> to vector<16x128xbf16>
    %c0_10 = arith.constant 0 : index
    %c0_11 = arith.constant 0 : index
    %23 = vector.load %arg5[%c0_10, %c0_11] : memref<128x128xbf16, #tpu.memory_space<vmem>>, vector<128x128xbf16>
    %cst_12 = arith.constant dense<0.000000e+00> : vector<16x128xf32>
    %24 = tpu.matmul %22, %23, %cst_12 {dimension_numbers = #tpu.dot_dimension_numbers<[1], [0], [0], [1], [0, 0, 1, 1], [], []>} : vector<16x128xbf16>, vector<128x128xbf16>, vector<16x128xf32> -> vector<16x128xf32>
    %c0_i32_13 = arith.constant 0 : i32
    %25 = arith.cmpi slt, %arg1, %c0_i32_13 : i32
    %26 = arith.extui %25 : i1 to i32
    %c0_i32_14 = arith.constant 0 : i32
    %27 = arith.cmpi ne, %26, %c0_i32_14 : i32
    scf.if %27 {
      %c0_17 = arith.constant 0 : index
      %c0_18 = arith.constant 0 : index
      %31 = vector.load %arg8[%c0_17, %c0_18] : memref<16x128xf32, #tpu.memory_space<vmem>>, vector<16x128xf32>
      %32 = arith.addf %31, %24 : vector<16x128xf32>
      %c0_19 = arith.constant 0 : index
      %c0_20 = arith.constant 0 : index
      %33 = vector.load %arg8[%c0_19, %c0_20] : memref<16x128xf32, #tpu.memory_space<vmem>>, vector<16x128xf32>
      tpu.vector_store %arg8[%c0_19, %c0_20], %32 {strides = array<i32>} : memref<16x128xf32, #tpu.memory_space<vmem>>, vector<16x128xf32>,
    } else {
    }
    %c0_i32_15 = arith.constant 0 : i32
    %28 = arith.cmpi eq, %arg1, %c0_i32_15 : i32
    %29 = arith.extui %28 : i1 to i32
    %c0_i32_16 = arith.constant 0 : i32
    %30 = arith.cmpi ne, %29, %c0_i32_16 : i32
    scf.if %30 {
      %c0_17 = arith.constant 0 : index
      %c0_18 = arith.constant 0 : index
      %31 = vector.load %arg8[%c0_17, %c0_18] : memref<16x128xf32, #tpu.memory_space<vmem>>, vector<16x128xf32>
      %32 = arith.addf %31, %24 : vector<16x128xf32>
      %c0_19 = arith.constant 0 : index
      %c0_20 = arith.constant 0 : index
      %33 = vector.load %arg6[%c0_19, %c0_20] : memref<1x128xf32, #tpu.memory_space<vmem>>, vector<1x128xf32>
      %34 = vector.broadcast %33 : vector<1x128xf32> to vector<16x128xf32>
      %35 = arith.addf %32, %34 : vector<16x128xf32>
      %c0_21 = arith.constant 0 : index
      %c0_22 = arith.constant 0 : index
      %36 = vector.load %arg7[%c0_21, %c0_22] : memref<16x128xf32, #tpu.memory_space<vmem>>, vector<16x128xf32>
      tpu.vector_store %arg7[%c0_21, %c0_22], %35 {strides = array<i32>} : memref<16x128xf32, #tpu.memory_space<vmem>>, vector<16x128xf32>,
    } else {
    }
    return
  }
  func.func @transform_0(%arg0: i32, %arg1: i32) -> (i32, i32) {
    %c0_i32 = arith.constant 0 : i32
    %c0_i32_0 = arith.constant 0 : i32
    return %arg0, %c0_i32 : i32, i32
  }
  func.func @transform_1(%arg0: i32, %arg1: i32) -> (i32, i32) {
    %c0_i32 = arith.constant 0 : i32
    %c0_i32_0 = arith.constant 0 : i32
    return %c0_i32, %arg1 : i32, i32
  }
  func.func @transform_2(%arg0: i32, %arg1: i32) -> (i32, i32) {
    %c0_i32 = arith.constant 0 : i32
    %c0_i32_0 = arith.constant 0 : i32
    return %c0_i32, %arg1 : i32, i32
  }
  func.func @transform_3(%arg0: i32, %arg1: i32) -> (i32, i32) {
    %c0_i32 = arith.constant 0 : i32
    %c0_i32_0 = arith.constant 0 : i32
    return %arg1, %c0_i32 : i32, i32
  }
  func.func @transform_4(%arg0: i32, %arg1: i32) -> (i32, i32) {
    %c0_i32 = arith.constant 0 : i32
    %c0_i32_0 = arith.constant 0 : i32
    %c0_i32_1 = arith.constant 0 : i32
    return %c0_i32, %c0_i32_0 : i32, i32
  }
  func.func @transform_5(%arg0: i32, %arg1: i32) -> (i32, i32) {
    %c0_i32 = arith.constant 0 : i32
    %c0_i32_0 = arith.constant 0 : i32
    return %arg0, %c0_i32 : i32, i32
  }
}

</mosaic_0001>

<bundles_post_ra>
// kernel: tpu_custom_call.1
= control target key start
LH: loop header
LB: loop body
LE: loop exit
PB: predicated region body
PF: predicated region fallthrough
CT: control target
= control target key end

     0   :  { %10 = vsyncpa [#allocation4], 0  ;;  %s671_s0 = inlined_call_operand.hbm [shape: bf16[16,128], index: 0, kind: input, shape index: {}]   ;;  %s672_s1 = inlined_call_operand.hbm [shape: bf16[128,128], index: 1, kind: input, shape index: {}]   ;;  %s673_s2 = inlined_call_operand.vmem [shape: f32[1,128], index: 2, kind: input, shape index: {}]   ;;  %s674_s3 = inlined_call_operand.hbm [shape: bf16[128,128], index: 3, kind: input, shape index: {}]   ;;  %s675_s4 = inlined_call_operand.vmem [shape: f32[1,128], index: 4, kind: input, shape index: {}]   ;;  %s676_s5 = inlined_call_operand.hbm [shape: f32[16,128], index: 5, kind: output, shape index: {}]  }
   0x1   :  { %11 = vsyncpa [#allocation7], 0 }
   0x2   :  { %12 = vsyncpa [#allocation5], 0  ;;  %s561_s18 = smov [#allocation6]   ;;  %s562_s20 = smov [#allocation3]  }
   0x3   :  { %s30_s19 = sshll.u32 %s561_s18, 4  ;;  %s18_s21 = sshll.u32 %s562_s20, 4  ;;  %s31_s19 = int_to_ptr.vmem [resolvable:$true] %s30_s19  ;;  %s601_s21 = int_to_ptr.vmem [resolvable:$true] %s18_s21 }
   0x4   :  { %s467_s24 = scalar_lea.hbm %s672_s1, 1024 }
   0x5   :  { %p468_p0 = scmp.ne.s32.totalorder %s672_s1, %s467_s24  ;;  %p471_p1 = scmp.lt.u32.totalorder %s467_s24, %s672_s1 }
   0x7   :  { %p473_p2 = pnand %p471_p1, %p468_p0 }
   0x9   :  { %476 = shalt.err (!%p473_p2)
}
   0xa   :  { %s477_s29 = scalar_lea.vmem %s31_s19, 1024  ;;  %p482_p4 = scmp.lt.s32.totalorder %s31_s19, %s31_s19 }
   0xb   :  { %p478_p3 = scmp.ne.s32.totalorder %s31_s19, %s477_s29  ;;  %p483_p5 = scmp.lt.s32.totalorder %s477_s29, %s477_s29 }
   0xd   :  { %p484_p6 = por %p483_p5, %p482_p4 }
   0xf   :  { %p485_p7 = pnand %p484_p6, %p478_p3 }
  0x11   :  { %488 = shalt.err (!%p485_p7)
}
  0x12   :  { %s563_s30 = smov 64   ;;  %s564_s6 = smov 4  }
  0x13   :  { %36 = dma.hbm_to_vmem [thread:$0]  %s672_s1, 1024, %s31_s19, [#allocation7], %s563_s30, %s563_s30, %s564_s6  }
  0x14   :  { %s489_s11 = scalar_lea.hbm %s671_s0, 128 }
  0x15   :  { %p490_p8 = scmp.ne.s32.totalorder %s671_s0, %s489_s11  ;;  %p493_p9 = scmp.lt.u32.totalorder %s489_s11, %s671_s0 }
  0x17   :  { %p495_p10 = pnand %p493_p9, %p490_p8 }
  0x19   :  { %498 = shalt.err (!%p495_p10)
}
  0x1a   :  { %s499_s16 = scalar_lea.vmem %s601_s21, 128  ;;  %p504_p12 = scmp.lt.s32.totalorder %s601_s21, %s601_s21 }
  0x1b   :  { %p500_p11 = scmp.ne.s32.totalorder %s601_s21, %s499_s16  ;;  %p505_p13 = scmp.lt.s32.totalorder %s499_s16, %s499_s16 }
  0x1d   :  { %p506_p0 = por %p505_p13, %p504_p12 }
  0x1f   :  { %p507_p1 = pnand %p506_p0, %p500_p11 }
  0x21   :  { %510 = shalt.err (!%p507_p1)
}
  0x22   :  { %24 = dma.hbm_to_vmem [thread:$0]  %s671_s0, 128, %s601_s21, [#allocation4], %s563_s30, %s563_s30, %s564_s6  }
  0x23   :  { %s565_s18 = smov [#allocation8]   ;;  %s511_s23 = scalar_lea.hbm %s674_s3, 1024 }
  0x24   :  { %s44_s19 = sshll.u32 %s565_s18, 4  ;;  %p512_p2 = scmp.ne.s32.totalorder %s674_s3, %s511_s23  ;;  %s45_s19 = int_to_ptr.vmem [resolvable:$true] %s44_s19 }
  0x25   :  { %p515_p3 = scmp.lt.u32.totalorder %s511_s23, %s674_s3 }
  0x27   :  { %p517_p4 = pnand %p515_p3, %p512_p2 }
  0x29   :  { %520 = shalt.err (!%p517_p4)
}
  0x2a   :  { %s521_s28 = scalar_lea.vmem %s45_s19, 1024  ;;  %p526_p6 = scmp.lt.s32.totalorder %s45_s19, %s45_s19 }
  0x2b   :  { %p522_p5 = scmp.ne.s32.totalorder %s45_s19, %s521_s28  ;;  %p527_p7 = scmp.lt.s32.totalorder %s521_s28, %s521_s28 }
  0x2d   :  { %p528_p8 = por %p527_p7, %p526_p6 }
  0x2f   :  { %p529_p9 = pnand %p528_p8, %p522_p5 }
  0x31   :  { %532 = shalt.err (!%p529_p9)
}
  0x32   :  { %50 = dma.hbm_to_vmem [thread:$0]  %s674_s3, 1024, %s45_s19, [#allocation7], %s563_s30, %s563_s30, %s564_s6  }
  0x33   :  { %555 = dma.done.wait [#allocation4], 128  }
  0x34   :  { %556 = vsyncadd [#allocation4], 4294967168 }
  0x35   :  { %557 = dma.done.wait [#allocation7], 2048  }
  0x36   :  { %558 = vsyncadd [#allocation7], 4294965248  ;;  %v566_v0 = vmov 0.0   ;;  %vm567_vm0 = vmmov 0   ;;  %v446_v1 = vld [vmem:[#allocation6] sm:$0xff]   ;;  %v447_v2 = vld [vmem:[#allocation6 + $0x8] sm:$0xff]  }
  0x37   :  { %396 = vmatprep.subr.bf16.mxu0 %v566_v0  ;;  %412 = vmatprep.mubr.msk.bf16.mxu0 %vm567_vm0, %v566_v0  ;;  %v448_v3 = vld [vmem:[#allocation6 + $0x10] sm:$0xff]   ;;  %v449_v4 = vld [vmem:[#allocation6 + $0x18] sm:$0xff]   ;;  %v450_v5 = vld [vmem:[#allocation6 + $0x20] sm:$0xff]   ;;  %s568_s6 = smov [#allocation9]  }
  0x38   :  { %416 = vmatprep.subr.bf16.mxu1 %v566_v0  ;;  %432 = vmatprep.mubr.msk.bf16.mxu1 %vm567_vm0, %v566_v0  ;;  %v451_v6 = vld [vmem:[#allocation6 + $0x28] sm:$0xff]   ;;  %v452_v7 = vld [vmem:[#allocation6 + $0x30] sm:$0xff]   ;;  %v453_v8 = vld [vmem:[#allocation6 + $0x38] sm:$0xff]   ;;  %s346_s7 = sshll.u32 %s568_s6, 4  ;;  %s347_s7 = int_to_ptr.vmem [resolvable:$true] %s346_s7 }
  0x39   :  { %397 = vmatpush3.bf16.msra.mxu0 %v446_v1  ;;  %v454_v9 = vld [vmem:[#allocation3] sm:$0xff]   ;;  %v455_v10 = vld [vmem:[#allocation8] sm:$0xff]   ;;  %v456_v11 = vld [vmem:[#allocation8 + $0x8] sm:$0xff]   ;;  %s533_s8 = scalar_lea.vmem %s347_s7, 256  ;;  %p538_p11 = scmp.lt.s32.totalorder %s347_s7, %s347_s7 }
  0x3a   :  { %398 = vmatprep.subr.bf16.mxu0 %v566_v0  ;;  %417 = vmatpush3.bf16.msra.mxu1 %v455_v10  ;;  %v457_v12 = vld [vmem:[#allocation8 + $0x10] sm:$0xff]   ;;  %v458_v13 = vld [vmem:[#allocation8 + $0x18] sm:$0xff]   ;;  %v459_v14 = vld [vmem:[#allocation8 + $0x20] sm:$0xff]   ;;  %p534_p10 = scmp.ne.s32.totalorder %s347_s7, %s533_s8  ;;  %p539_p12 = scmp.lt.s32.totalorder %s533_s8, %s533_s8 }
  0x3b   :  { %418 = vmatprep.subr.bf16.mxu1 %v566_v0  ;;  %v460_v15 = vld [vmem:[#allocation8 + $0x28] sm:$0xff]   ;;  %v461_v16 = vld [vmem:[#allocation8 + $0x30] sm:$0xff]   ;;  %v462_v17 = vld [vmem:[#allocation8 + $0x38] sm:$0xff]  }
  0x3c   :  { %v359_v18 = vld [vmem:[%s673_s2] ss:$0 sm:$0xff]  ;;  %p540_p13 = por %p539_p12, %p538_p11 }
  0x3d   :  { %399 = vmatpush3.bf16.msra.mxu0 %v447_v2  ;;  %v377_v44 = vld [vmem:[%s675_s4] ss:$0 sm:$0xff] }
  0x3e   :  { %400 = vmatprep.subr.bf16.mxu0 %v566_v0  ;;  %419 = vmatpush3.bf16.msra.mxu1 %v456_v11  ;;  %p541_p0 = pnand %p540_p13, %p534_p10 }
  0x3f   :  { %420 = vmatprep.subr.bf16.mxu1 %v566_v0 }
  0x41   :  { %401 = vmatpush3.bf16.msra.mxu0 %v448_v3 }
  0x42   :  { %402 = vmatprep.subr.bf16.mxu0 %v566_v0  ;;  %421 = vmatpush3.bf16.msra.mxu1 %v457_v12 }
  0x43   :  { %422 = vmatprep.subr.bf16.mxu1 %v566_v0 }
  0x45   :  { %403 = vmatpush3.bf16.msra.mxu0 %v449_v4 }
  0x46   :  { %404 = vmatprep.subr.bf16.mxu0 %v566_v0  ;;  %423 = vmatpush3.bf16.msra.mxu1 %v458_v13 }
  0x47   :  { %424 = vmatprep.subr.bf16.mxu1 %v566_v0 }
  0x49   :  { %405 = vmatpush3.bf16.msra.mxu0 %v450_v5 }
  0x4a   :  { %406 = vmatprep.subr.bf16.mxu0 %v566_v0  ;;  %425 = vmatpush3.bf16.msra.mxu1 %v459_v14 }
  0x4b   :  { %426 = vmatprep.subr.bf16.mxu1 %v566_v0 }
  0x4d   :  { %407 = vmatpush3.bf16.msra.mxu0 %v451_v6 }
  0x4e   :  { %408 = vmatprep.subr.bf16.mxu0 %v566_v0  ;;  %427 = vmatpush3.bf16.msra.mxu1 %v460_v15 }
  0x4f   :  { %428 = vmatprep.subr.bf16.mxu1 %v566_v0 }
  0x51   :  { %409 = vmatpush3.bf16.msra.mxu0 %v452_v7 }
  0x52   :  { %410 = vmatprep.subr.bf16.mxu0 %v566_v0  ;;  %429 = vmatpush3.bf16.msra.mxu1 %v461_v16 }
  0x53   :  { %430 = vmatprep.subr.bf16.mxu1 %v566_v0 }
  0x55   :  { %411 = vmatpush3.bf16.msra.mxu0 %v453_v8 }
  0x56   :  { %431 = vmatpush3.bf16.msra.mxu1 %v462_v17 }
  0x58   :  { %413 = vmatmul.mubr.bf16.vlgmr.msra.gmra.mrb[0].mxu0 %v454_v9 }
 0x12b   :  { %v182_v19 = vpop.f32.mrb[0].mxu0 }
 0x12c   :  { %v183_v20 = vadd.f32 %v359_v18, %v182_v19  ;;  %v414_v21 = vpop.f32.mrb[1].mxu0 }
 0x12d   :  { %v185_v22 = vpop.f32.mrb[2].mxu0 }
 0x12e   :  { %v191_v23 = vmul.f32 0.044715, %v183_v20  ;;  %v186_v24 = vadd.f32 %v359_v18, %v185_v22  ;;  %v415_v25 = vpop.f32.mrb[3].mxu0  ;;  %v189_v38 = vmul.f32 0.5, %v183_v20 }
 0x130   :  { %v193_v26 = vmul.f32 %v191_v23, %v183_v20  ;;  %v192_v27 = vmul.f32 0.044715, %v186_v24  ;;  %v190_v39 = vmul.f32 0.5, %v186_v24 }
 0x132   :  { %v195_v28 = vmul.f32 %v193_v26, %v183_v20  ;;  %v194_v29 = vmul.f32 %v192_v27, %v186_v24 }
 0x134   :  { %v196_v30 = vmul.f32 %v194_v29, %v186_v24  ;;  %v197_v31 = vadd.f32 %v195_v28, %v183_v20 }
 0x136   :  { %v198_v32 = vadd.f32 %v196_v30, %v186_v24  ;;  %v199_v33 = vmul.f32 0.7978846, %v197_v31 }
 0x138   :  { %v200_v34 = vmul.f32 0.7978846, %v198_v32  ;;  %463 = vtanh.f32 %v199_v33 }
 0x13a   :  { %465 = vtanh.f32 %v200_v34 }
 0x142   :  { %v464_v35 = vpop.eup %463 }
 0x143   :  { %v203_v36 = vadd.f32 1.0, %v464_v35 }
 0x144   :  { %v466_v37 = vpop.eup %465 }
 0x145   :  { %v204_v40 = vadd.f32 1.0, %v466_v37  ;;  %v205_v41 = vmul.f32 %v203_v36, %v189_v38 }
 0x147   :  { %v206_v42 = vmul.f32 %v204_v40, %v190_v39 }
 0x149   :  { %v207_v43 = vpack.c.bf16 %v206_v42, %v205_v41 }
 0x14b   :  { %433 = vmatmul.mubr.bf16.vlgmr.msra.gmra.mrb[0].mxu1 %v207_v43 }
 0x21e   :  { %v306_v45 = vpop.f32.mrb[0].mxu1 }
 0x21f   :  { %v337_v46 = vadd.f32 %v377_v44, %v306_v45  ;;  %v434_v47 = vpop.f32.mrb[1].mxu1 }
 0x220   :  { %v309_v48 = vpop.f32.mrb[2].mxu1 }
 0x221   :  { %339 = vst [vmem:[#allocation9] sm:$0xff] %v337_v46  ;;  %v338_v49 = vadd.f32 %v377_v44, %v309_v48  ;;  %v435_v50 = vpop.f32.mrb[3].mxu1 }
 0x223   :  { %340 = vst [vmem:[#allocation9 + $0x8] sm:$0xff] %v338_v49 }
 0x224   :  { %544 = shalt.err (!%p541_p0)
}
 0x225   :  { %s545_s10 = scalar_lea.hbm %s676_s5, 256 }
 0x226   :  { %p546_p1 = scmp.ne.s32.totalorder %s676_s5, %s545_s10  ;;  %p549_p2 = scmp.lt.u32.totalorder %s545_s10, %s676_s5 }
 0x228   :  { %p551_p3 = pnand %p549_p2, %p546_p1 }
 0x22a   :  { %554 = shalt.err (!%p551_p3)
}
 0x22b   :  { %s569_s15 = smov 128   ;;  %s570_s16 = smov 8  }
 0x22c   :  { %352 = dma.vmem_to_hbm [thread:$0]  %s347_s7, 256, %s676_s5, [#allocation5], %s569_s15, %s569_s15, %s570_s16  }
 0x22d   :  { %559 = dma.done.wait [#allocation5], 256  }
 0x22e   :  { %560 = vsyncadd [#allocation5], 4294967040 }
 0x22f   :  { %356 = vsyncpa [#allocation4], 1 }
 0x230   :  { %357 = vsyncpa [#allocation7], 1 }
 0x231   :  { %358 = vsyncpa [#allocation5], 1 }

</bundles_post_ra>
